<compile_context>
chip_gen: v7x
topology: tpu7x:2x2x1
jax: 0.10.0
libtpu: 0.0.40
codegen_flags: <defaults>
</compile_context>

<pallas_src>
import jax
import jax.numpy as jnp
from jax.experimental import pallas as pl
from jax.experimental.pallas import tpu as pltpu


# ----------------------------------------------------------------------------
# Fused kernel: conv3x3+ReLU -> SE gate -> conv3x3+ReLU  (S samples / step)
# ----------------------------------------------------------------------------
def _fused_block_kernel(x_ref, wb1_ref, b1_ref, wb2_ref, b2_ref,
                        rowpool_ref, pool_ref, wse1_ref, bse1_ref,
                        wse2_ref, bse2_ref, scat_ref, rowexp_ref, o_ref):
    M, WC1 = o_ref.shape                       # M = S*H rows, WC1 = W*C1 lanes
    S = rowpool_ref.shape[0]
    H = M // S

    # Per-sample row masks: vertical taps must not leak across sample
    # boundaries (emulates the conv's zero padding at the top/bottom rows).
    rows = jax.lax.broadcasted_iota(jnp.int32, (M, WC1), 0)
    rin = rows % H
    mask_up = rin >= 1                         # row-1 exists within the sample
    mask_dn = rin < (H - 1)                    # row+1 exists within the sample

    x = x_ref[...]                             # (M, W*Cin), bf16

    # ---- first conv stage: 3x3 / stride 1 / pad 1, fused ReLU ---------------
    # Horizontal taps + horizontal zero padding are folded into the banded
    # weight matrices wb1[dh]; vertical taps via sublane roll (XLU) + mask.
    acc = jnp.dot(x, wb1_ref[1], preferred_element_type=jnp.float32)
    p0 = jnp.dot(x, wb1_ref[0], preferred_element_type=jnp.float32)
    p2 = jnp.dot(x, wb1_ref[2], preferred_element_type=jnp.float32)
    acc += jnp.where(mask_up, pltpu.roll(p0, shift=1, axis=0), 0.0)
    acc += jnp.where(mask_dn, pltpu.roll(p2, shift=M - 1, axis=0), 0.0)
    y1 = jnp.maximum(acc + b1_ref[...], 0.0)   # (M, W*C1), f32

    # ---- SE attention: per-sample avg-pool -> fc -> relu -> fc -> sigmoid ----
    per_sample = jnp.dot(rowpool_ref[...], y1,
                         preferred_element_type=jnp.float32)   # (S, W*C1), /HW
    pooled = jnp.dot(per_sample, pool_ref[...],
                     preferred_element_type=jnp.float32)       # (S, C1)
    h1 = jnp.maximum(jnp.dot(pooled, wse1_ref[...],
                             preferred_element_type=jnp.float32)
                     + bse1_ref[...], 0.0)                     # (S, Cr)
    z2 = jnp.dot(h1, wse2_ref[...],
                 preferred_element_type=jnp.float32) + bse2_ref[...]
    gate = jax.nn.sigmoid(z2)                                  # (S, C1)
    gate_rows = jnp.dot(gate, scat_ref[...],
                        preferred_element_type=jnp.float32)    # (S, W*C1)
    gate_full = jnp.dot(rowexp_ref[...], gate_rows,
                        preferred_element_type=jnp.float32)    # (M, W*C1)
    y1s = (y1 * gate_full).astype(jnp.bfloat16)                # per-chan scale

    # ---- last conv stage: 3x3 / stride 1 / pad 1, fused ReLU ----------------
    acc2 = jnp.dot(y1s, wb2_ref[1], preferred_element_type=jnp.float32)
    q0 = jnp.dot(y1s, wb2_ref[0], preferred_element_type=jnp.float32)
    q2 = jnp.dot(y1s, wb2_ref[2], preferred_element_type=jnp.float32)
    acc2 += jnp.where(mask_up, pltpu.roll(q0, shift=1, axis=0), 0.0)
    acc2 += jnp.where(mask_dn, pltpu.roll(q2, shift=M - 1, axis=0), 0.0)
    o_ref[...] = jnp.maximum(acc2 + b2_ref[...], 0.0)          # lane-dense vst


# ----------------------------------------------------------------------------
# One-time parameter preparation (hoisted off the per-call path)
# ----------------------------------------------------------------------------
def _band_weights(w_hwio, width):
    """(3,3,Cin,Cout) HWIO conv weight -> (3, W*Cin, W*Cout) banded matrices.

    band[dh][wi*Cin+ci, wo*Cout+co] = w[dh, dw, ci, co] with wi = wo + dw - 1
    (entries with wi out of range are absent == horizontal zero padding)."""
    kh, kw, cin, cout = w_hwio.shape
    bands = []
    for dh in range(kh):
        band = jnp.zeros((width * cin, width * cout), jnp.float32)
        for dw in range(kw):
            shift = jnp.eye(width, k=1 - dw, dtype=jnp.float32)   # wi = wo+dw-1
            band = band + jnp.einsum(
                "xy,io->xiyo", shift, w_hwio[dh, dw]
            ).reshape(width * cin, width * cout)
        bands.append(band)
    return jnp.stack(bands, axis=0)


def _pick_samples_per_step(n, h, target_rows=256):
    """Samples folded into one grid step: big matmul M, but >=2 grid steps
    whenever n>=2 so both TensorCores get work on v7x."""
    s = min(max(1, target_rows // h), max(1, n // 2) if n >= 2 else 1)
    while n % s:
        s -= 1
    return max(s, 1)


def prepare_params(params, n, h, w):
    c1 = params["w_first"].shape[-1]
    s = _pick_samples_per_step(n, h)
    eye_c1 = jnp.eye(c1, dtype=jnp.float32)
    eye_s = jnp.eye(s, dtype=jnp.float32)
    return {
        # banded conv weights in bf16 (MXU-native), f32 accumulation in-kernel
        "wb1": _band_weights(params["w_first"], w).astype(jnp.bfloat16),
        "b1_row": jnp.tile(params["b_first"], w).reshape(1, w * c1)
                     .astype(jnp.float32),
        "wb2": _band_weights(params["w_last"], w).astype(jnp.bfloat16),
        "b2_row": jnp.tile(params["b_last"], w).reshape(1, w * c1)
                     .astype(jnp.float32),
        # per-sample spatial mean (rows) and channel fold (lanes)
        "rowpool": jnp.kron(eye_s, jnp.ones((1, h), jnp.float32)) / float(h * w),
        "pool": jnp.tile(eye_c1, (w, 1)),                      # (W*C1, C1)
        # gate broadcast back to rows / lanes
        "scat": jnp.tile(eye_c1, (1, w)),                      # (C1, W*C1)
        "rowexp": jnp.kron(eye_s, jnp.ones((h, 1), jnp.float32)),  # (S*H, S)
        # SE FCs stay f32
        "w_se1": params["w1"].astype(jnp.float32),
        "b_se1": params["b1"].reshape(1, -1).astype(jnp.float32),
        "w_se2": params["w2"].astype(jnp.float32),
        "b_se2": params["b2"].reshape(1, -1).astype(jnp.float32),
    }


# ----------------------------------------------------------------------------
# CustomBlock forward: first_blocks -> attention_block -> last_blocks
# ----------------------------------------------------------------------------
def custom_block_forward(x_nchw, kp):
    n, cin, h, w = x_nchw.shape
    s = kp["rowexp"].shape[1]
    assert n % s == 0, "prepare_params must be built for this batch size"
    steps = n // s
    m = s * h
    wc_in = w * cin
    wc1 = kp["b1_row"].shape[-1]
    c1 = kp["pool"].shape[-1]
    cr = kp["w_se1"].shape[-1]

    # NCHW -> lane-dense (N*H, W*Cin) in bf16; single fused XLA op, no pad.
    x2d = jnp.transpose(x_nchw, (0, 2, 3, 1)).reshape(n * h, wc_in) \
             .astype(jnp.bfloat16)

    flops = 2 * n * h * w * c1 * (9 * cin + 9 * c1) + 4 * n * c1 * cr
    transcendentals = n * c1
    bytes_accessed = (n * h * w * cin * 2 + n * h * w * c1 * 4
                      + 2 * (3 * wc_in * wc1 + 3 * wc1 * wc1)
                      + 4 * (wc1 * c1 + c1 * wc1 + c1 * cr + cr * c1
                             + 2 * s * m + 2 * wc1))

    out = pl.pallas_call(
        _fused_block_kernel,
        out_shape=jax.ShapeDtypeStruct((n * h, wc1), jnp.float32),
        grid=(steps,),
        in_specs=[
            pl.BlockSpec((m, wc_in), lambda i: (i, 0)),     # x rows chunk
            pl.BlockSpec((3, wc_in, wc1), lambda i: (0, 0, 0)),  # wb1
            pl.BlockSpec((1, wc1), lambda i: (0, 0)),       # b1_row
            pl.BlockSpec((3, wc1, wc1), lambda i: (0, 0, 0)),    # wb2
            pl.BlockSpec((1, wc1), lambda i: (0, 0)),       # b2_row
            pl.BlockSpec((s, m), lambda i: (0, 0)),         # rowpool
            pl.BlockSpec((wc1, c1), lambda i: (0, 0)),      # pool
            pl.BlockSpec((c1, cr), lambda i: (0, 0)),       # w_se1
            pl.BlockSpec((1, cr), lambda i: (0, 0)),        # b_se1
            pl.BlockSpec((cr, c1), lambda i: (0, 0)),       # w_se2
            pl.BlockSpec((1, c1), lambda i: (0, 0)),        # b_se2
            pl.BlockSpec((c1, wc1), lambda i: (0, 0)),      # scat
            pl.BlockSpec((m, s), lambda i: (0, 0)),         # rowexp
        ],
        out_specs=pl.BlockSpec((m, wc1), lambda i: (i, 0)),
        compiler_params=pltpu.CompilerParams(
            dimension_semantics=("parallel",),              # 2-TC sharding
            vmem_limit_bytes=32 * 1024 * 1024),
        cost_estimate=pl.CostEstimate(
            flops=flops, transcendentals=transcendentals,
            bytes_accessed=bytes_accessed),
    )(x2d, kp["wb1"], kp["b1_row"], kp["wb2"], kp["b2_row"],
      kp["rowpool"], kp["pool"], kp["w_se1"], kp["b_se1"],
      kp["w_se2"], kp["b_se2"], kp["scat"], kp["rowexp"])

    # (N*H, W*C1) -> NCHW (kept only to preserve the module's interface).
    return jnp.transpose(out.reshape(n, h, w, c1), (0, 3, 1, 2))


# ----------------------------------------------------------------------------
# Pure-JAX reference (for correctness check)
# ----------------------------------------------------------------------------
def _reference(x_nchw, p):
    x = jnp.transpose(x_nchw, (0, 2, 3, 1))
    y = jax.lax.conv_general_dilated(
        x, p["w_first"], (1, 1), "SAME",
        dimension_numbers=("NHWC", "HWIO", "NHWC"))
    y = jnp.maximum(y + p["b_first"], 0.0)
    pooled = jnp.mean(y, axis=(1, 2))
    g = jnp.maximum(pooled @ p["w1"] + p["b1"], 0.0)
    g = jax.nn.sigmoid(g @ p["w2"] + p["b2"])
    y = y * g[:, None, None, :]
    y = jax.lax.conv_general_dilated(
        y, p["w_last"], (1, 1), "SAME",
        dimension_numbers=("NHWC", "HWIO", "NHWC"))
    y = jnp.maximum(y + p["b_last"], 0.0)
    return jnp.transpose(y, (0, 3, 1, 2))


if __name__ == "__main__":
    key = jax.random.PRNGKey(0)
    kx, k1, k2, k3, k4, k5, k6, k7, k8 = jax.random.split(key, 9)

    N, Cin, H, W = 2, 4, 16, 16
    C1 = 8          # channels after first stage
    Cr = 4          # SE bottleneck channels (C1 // 2)

    x = jax.random.normal(kx, (N, Cin, H, W), jnp.float32)
    params = {
        "w_first": jax.random.normal(k1, (3, 3, Cin, C1), jnp.float32) * 0.1,
        "b_first": jax.random.normal(k5, (C1,), jnp.float32) * 0.05,
        "w1": jax.random.normal(k2, (C1, Cr), jnp.float32) * 0.1,
        "b1": jax.random.normal(k6, (Cr,), jnp.float32) * 0.05,
        "w2": jax.random.normal(k3, (Cr, C1), jnp.float32) * 0.1,
        "b2": jax.random.normal(k7, (C1,), jnp.float32) * 0.05,
        "w_last": jax.random.normal(k4, (3, 3, C1, C1), jnp.float32) * 0.1,
        "b_last": jax.random.normal(k8, (C1,), jnp.float32) * 0.05,
    }

    kp = prepare_params(params, N, H, W)        # hoisted once, reused per call
    fwd = jax.jit(custom_block_forward)
    y = fwd(x, kp)
    jax.block_until_ready(y)

    y_ref = jax.jit(_reference)(x, params)
    assert y.shape == (N, C1, H, W)
    assert jnp.allclose(y, y_ref, rtol=3e-2, atol=3e-2), \
        float(jnp.max(jnp.abs(y - y_ref)))
    print("KERNEL_OK")
</pallas_src>

<mosaic_0001>
module attributes {stable_mosaic.version = 11 : i64} {
  func.func @_fused_block_kernel(%arg0: i32, %arg1: memref<16x64xbf16, #tpu.memory_space<vmem>>, %arg2: memref<3x64x128xbf16, #tpu.memory_space<vmem>>, %arg3: memref<1x128xf32, #tpu.memory_space<vmem>>, %arg4: memref<3x128x128xbf16, #tpu.memory_space<vmem>>, %arg5: memref<1x128xf32, #tpu.memory_space<vmem>>, %arg6: memref<1x16xf32, #tpu.memory_space<vmem>>, %arg7: memref<128x8xf32, #tpu.memory_space<vmem>>, %arg8: memref<8x4xf32, #tpu.memory_space<vmem>>, %arg9: memref<1x4xf32, #tpu.memory_space<vmem>>, %arg10: memref<4x8xf32, #tpu.memory_space<vmem>>, %arg11: memref<1x8xf32, #tpu.memory_space<vmem>>, %arg12: memref<8x128xf32, #tpu.memory_space<vmem>>, %arg13: memref<16x1xf32, #tpu.memory_space<vmem>>, %arg14: memref<16x128xf32, #tpu.memory_space<vmem>>) attributes {dimension_semantics = [#tpu.dimension_semantics<parallel>], iteration_bounds = array<i64: 2>, scalar_prefetch = 0 : i64, scratch_operands = 0 : i64, tpu.core_type = #tpu.core_type<tc>, window_params = [{transform_indices = @transform_0, window_bounds = array<i64: 16, 64>}, {pipeline_mode = #tpu.pipeline_mode<synchronous>, transform_indices = @transform_1, window_bounds = array<i64: 3, 64, 128>}, {pipeline_mode = #tpu.pipeline_mode<synchronous>, transform_indices = @transform_2, window_bounds = array<i64: 1, 128>}, {pipeline_mode = #tpu.pipeline_mode<synchronous>, transform_indices = @transform_3, window_bounds = array<i64: 3, 128, 128>}, {pipeline_mode = #tpu.pipeline_mode<synchronous>, transform_indices = @transform_4, window_bounds = array<i64: 1, 128>}, {pipeline_mode = #tpu.pipeline_mode<synchronous>, transform_indices = @transform_5, window_bounds = array<i64: 1, 16>}, {pipeline_mode = #tpu.pipeline_mode<synchronous>, transform_indices = @transform_6, window_bounds = array<i64: 128, 8>}, {pipeline_mode = #tpu.pipeline_mode<synchronous>, transform_indices = @transform_7, window_bounds = array<i64: 8, 4>}, {pipeline_mode = #tpu.pipeline_mode<synchronous>, transform_indices = @transform_8, window_bounds = array<i64: 1, 4>}, {pipeline_mode = #tpu.pipeline_mode<synchronous>, transform_indices = @transform_9, window_bounds = array<i64: 4, 8>}, {pipeline_mode = #tpu.pipeline_mode<synchronous>, transform_indices = @transform_10, window_bounds = array<i64: 1, 8>}, {pipeline_mode = #tpu.pipeline_mode<synchronous>, transform_indices = @transform_11, window_bounds = array<i64: 8, 128>}, {pipeline_mode = #tpu.pipeline_mode<synchronous>, transform_indices = @transform_12, window_bounds = array<i64: 16, 1>}, {transform_indices = @transform_13, window_bounds = array<i64: 16, 128>}]} {
    %0 = tpu.iota {dimensions = array<i32: 0>} : vector<16x128xi32>
    %c16_i32 = arith.constant 16 : i32
    %c0_i32 = arith.constant 0 : i32
    %1 = arith.cmpi eq, %c16_i32, %c0_i32 : i32
    %c1_i32 = arith.constant 1 : i32
    %2 = arith.select %1, %c1_i32, %c16_i32 : i32
    %3 = vector.broadcast %2 : i32 to vector<16x128xi32>
    %4 = arith.remsi %0, %3 : vector<16x128xi32>
    %c0_i32_0 = arith.constant 0 : i32
    %5 = vector.broadcast %c0_i32_0 : i32 to vector<16x128xi32>
    %6 = arith.cmpi ne, %4, %5 : vector<16x128xi32>
    %c0_i32_1 = arith.constant 0 : i32
    %7 = vector.broadcast %c0_i32_1 : i32 to vector<16x128xi32>
    %8 = arith.cmpi slt, %4, %7 : vector<16x128xi32>
    %c0_i32_2 = arith.constant 0 : i32
    %9 = arith.cmpi slt, %2, %c0_i32_2 : i32
    %10 = vector.broadcast %9 : i1 to vector<16x128xi1>
    %11 = vector.broadcast %10 : vector<16x128xi1> to vector<16x128xi1>
    %12 = arith.xori %8, %11 : vector<16x128xi1>
    %13 = arith.andi %12, %6 : vector<16x128xi1>
    %14 = vector.broadcast %2 : i32 to vector<16x128xi32>
    %15 = arith.addi %4, %14 : vector<16x128xi32>
    %16 = arith.select %13, %15, %4 : vector<16x128xi1>, vector<16x128xi32>
    %c1_i32_3 = arith.constant 1 : i32
    %17 = vector.broadcast %c1_i32_3 : i32 to vector<16x128xi32>
    %18 = arith.cmpi sge, %16, %17 : vector<16x128xi32>
    %c15_i32 = arith.constant 15 : i32
    %19 = vector.broadcast %c15_i32 : i32 to vector<16x128xi32>
    %20 = arith.cmpi slt, %16, %19 : vector<16x128xi32>
    %c0 = arith.constant 0 : index
    %c0_4 = arith.constant 0 : index
    %21 = vector.load %arg1[%c0, %c0_4] : memref<16x64xbf16, #tpu.memory_space<vmem>>, vector<16x64xbf16>
    %c1 = arith.constant 1 : index
    %c0_5 = arith.constant 0 : index
    %c0_6 = arith.constant 0 : index
    %22 = vector.load %arg2[%c1, %c0_5, %c0_6] : memref<3x64x128xbf16, #tpu.memory_space<vmem>>, vector<1x64x128xbf16>
    %23 = vector.shape_cast %22 : vector<1x64x128xbf16> to vector<64x128xbf16>
    %cst = arith.constant dense<0.000000e+00> : vector<16x128xf32>
    %24 = tpu.matmul %21, %23, %cst {dimension_numbers = #tpu.dot_dimension_numbers<[1], [0], [0], [1], [0, 0, 1, 1], [], []>} : vector<16x64xbf16>, vector<64x128xbf16>, vector<16x128xf32> -> vector<16x128xf32>
    %c0_7 = arith.constant 0 : index
    %c0_8 = arith.constant 0 : index
    %c0_9 = arith.constant 0 : index
    %25 = vector.load %arg2[%c0_7, %c0_8, %c0_9] : memref<3x64x128xbf16, #tpu.memory_space<vmem>>, vector<1x64x128xbf16>
    %26 = vector.shape_cast %25 : vector<1x64x128xbf16> to vector<64x128xbf16>
    %cst_10 = arith.constant dense<0.000000e+00> : vector<16x128xf32>
    %27 = tpu.matmul %21, %26, %cst_10 {dimension_numbers = #tpu.dot_dimension_numbers<[1], [0], [0], [1], [0, 0, 1, 1], [], []>} : vector<16x64xbf16>, vector<64x128xbf16>, vector<16x128xf32> -> vector<16x128xf32>
    %c2 = arith.constant 2 : index
    %c0_11 = arith.constant 0 : index
    %c0_12 = arith.constant 0 : index
    %28 = vector.load %arg2[%c2, %c0_11, %c0_12] : memref<3x64x128xbf16, #tpu.memory_space<vmem>>, vector<1x64x128xbf16>
    %29 = vector.shape_cast %28 : vector<1x64x128xbf16> to vector<64x128xbf16>
    %cst_13 = arith.constant dense<0.000000e+00> : vector<16x128xf32>
    %30 = tpu.matmul %21, %29, %cst_13 {dimension_numbers = #tpu.dot_dimension_numbers<[1], [0], [0], [1], [0, 0, 1, 1], [], []>} : vector<16x64xbf16>, vector<64x128xbf16>, vector<16x128xf32> -> vector<16x128xf32>
    %c1_i32_14 = arith.constant 1 : i32
    %31 = tpu.dynamic_rotate %27 by %c1_i32_14 dim 0 : vector<16x128xf32>, i32 -> vector<16x128xf32>
    %cst_15 = arith.constant 0.000000e+00 : f32
    %32 = vector.broadcast %cst_15 : f32 to vector<16x128xf32>
    %33 = arith.select %18, %31, %32 : vector<16x128xi1>, vector<16x128xf32>
    %34 = arith.addf %24, %33 : vector<16x128xf32>
    %c15_i32_16 = arith.constant 15 : i32
    %35 = tpu.dynamic_rotate %30 by %c15_i32_16 dim 0 : vector<16x128xf32>, i32 -> vector<16x128xf32>
    %cst_17 = arith.constant 0.000000e+00 : f32
    %36 = vector.broadcast %cst_17 : f32 to vector<16x128xf32>
    %37 = arith.select %20, %35, %36 : vector<16x128xi1>, vector<16x128xf32>
    %38 = arith.addf %34, %37 : vector<16x128xf32>
    %c0_18 = arith.constant 0 : index
    %c0_19 = arith.constant 0 : index
    %39 = vector.load %arg3[%c0_18, %c0_19] : memref<1x128xf32, #tpu.memory_space<vmem>>, vector<1x128xf32>
    %40 = vector.broadcast %39 : vector<1x128xf32> to vector<16x128xf32>
    %41 = arith.addf %38, %40 : vector<16x128xf32>
    %cst_20 = arith.constant 0.000000e+00 : f32
    %42 = vector.broadcast %cst_20 : f32 to vector<16x128xf32>
    %43 = arith.maximumf %41, %42 : vector<16x128xf32>
    %c0_21 = arith.constant 0 : index
    %c0_22 = arith.constant 0 : index
    %44 = vector.load %arg6[%c0_21, %c0_22] : memref<1x16xf32, #tpu.memory_space<vmem>>, vector<1x16xf32>
    %cst_23 = arith.constant dense<0.000000e+00> : vector<1x128xf32>
    %45 = tpu.matmul %44, %43, %cst_23 {dimension_numbers = #tpu.dot_dimension_numbers<[1], [0], [0], [1], [0, 0, 1, 1], [], []>} : vector<1x16xf32>, vector<16x128xf32>, vector<1x128xf32> -> vector<1x128xf32>
    %c0_24 = arith.constant 0 : index
    %c0_25 = arith.constant 0 : index
    %46 = vector.load %arg7[%c0_24, %c0_25] : memref<128x8xf32, #tpu.memory_space<vmem>>, vector<128x8xf32>
    %cst_26 = arith.constant dense<0.000000e+00> : vector<1x8xf32>
    %47 = tpu.matmul %45, %46, %cst_26 {dimension_numbers = #tpu.dot_dimension_numbers<[1], [0], [0], [1], [0, 0, 1, 1], [], []>} : vector<1x128xf32>, vector<128x8xf32>, vector<1x8xf32> -> vector<1x8xf32>
    %c0_27 = arith.constant 0 : index
    %c0_28 = arith.constant 0 : index
    %48 = vector.load %arg8[%c0_27, %c0_28] : memref<8x4xf32, #tpu.memory_space<vmem>>, vector<8x4xf32>
    %cst_29 = arith.constant dense<0.000000e+00> : vector<1x4xf32>
    %49 = tpu.matmul %47, %48, %cst_29 {dimension_numbers = #tpu.dot_dimension_numbers<[1], [0], [0], [1], [0, 0, 1, 1], [], []>} : vector<1x8xf32>, vector<8x4xf32>, vector<1x4xf32> -> vector<1x4xf32>
    %c0_30 = arith.constant 0 : index
    %c0_31 = arith.constant 0 : index
    %50 = vector.load %arg9[%c0_30, %c0_31] : memref<1x4xf32, #tpu.memory_space<vmem>>, vector<1x4xf32>
    %51 = arith.addf %49, %50 : vector<1x4xf32>
    %cst_32 = arith.constant 0.000000e+00 : f32
    %52 = vector.broadcast %cst_32 : f32 to vector<1x4xf32>
    %53 = arith.maximumf %51, %52 : vector<1x4xf32>
    %c0_33 = arith.constant 0 : index
    %c0_34 = arith.constant 0 : index
    %54 = vector.load %arg10[%c0_33, %c0_34] : memref<4x8xf32, #tpu.memory_space<vmem>>, vector<4x8xf32>
    %cst_35 = arith.constant dense<0.000000e+00> : vector<1x8xf32>
    %55 = tpu.matmul %53, %54, %cst_35 {dimension_numbers = #tpu.dot_dimension_numbers<[1], [0], [0], [1], [0, 0, 1, 1], [], []>} : vector<1x4xf32>, vector<4x8xf32>, vector<1x8xf32> -> vector<1x8xf32>
    %c0_36 = arith.constant 0 : index
    %c0_37 = arith.constant 0 : index
    %56 = vector.load %arg11[%c0_36, %c0_37] : memref<1x8xf32, #tpu.memory_space<vmem>>, vector<1x8xf32>
    %57 = arith.addf %55, %56 : vector<1x8xf32>
    %58 = arith.negf %57 : vector<1x8xf32>
    %59 = math.exp %58 : vector<1x8xf32>
    %cst_38 = arith.constant 1.000000e+00 : f32
    %60 = vector.broadcast %cst_38 : f32 to vector<1x8xf32>
    %61 = arith.addf %60, %59 : vector<1x8xf32>
    %62 = arith.divf %60, %61 : vector<1x8xf32>
    %c0_39 = arith.constant 0 : index
    %c0_40 = arith.constant 0 : index
    %63 = vector.load %arg12[%c0_39, %c0_40] : memref<8x128xf32, #tpu.memory_space<vmem>>, vector<8x128xf32>
    %cst_41 = arith.constant dense<0.000000e+00> : vector<1x128xf32>
    %64 = tpu.matmul %62, %63, %cst_41 {dimension_numbers = #tpu.dot_dimension_numbers<[1], [0], [0], [1], [0, 0, 1, 1], [], []>} : vector<1x8xf32>, vector<8x128xf32>, vector<1x128xf32> -> vector<1x128xf32>
    %c0_42 = arith.constant 0 : index
    %c0_43 = arith.constant 0 : index
    %65 = vector.load %arg13[%c0_42, %c0_43] : memref<16x1xf32, #tpu.memory_space<vmem>>, vector<16x1xf32>
    %cst_44 = arith.constant dense<0.000000e+00> : vector<16x128xf32>
    %66 = tpu.matmul %65, %64, %cst_44 {dimension_numbers = #tpu.dot_dimension_numbers<[1], [0], [0], [1], [0, 0, 1, 1], [], []>} : vector<16x1xf32>, vector<1x128xf32>, vector<16x128xf32> -> vector<16x128xf32>
    %67 = arith.mulf %43, %66 : vector<16x128xf32>
    %68 = arith.truncf %67 : vector<16x128xf32> to vector<16x128xbf16>
    %c1_45 = arith.constant 1 : index
    %c0_46 = arith.constant 0 : index
    %c0_47 = arith.constant 0 : index
    %69 = vector.load %arg4[%c1_45, %c0_46, %c0_47] : memref<3x128x128xbf16, #tpu.memory_space<vmem>>, vector<1x128x128xbf16>
    %70 = vector.shape_cast %69 : vector<1x128x128xbf16> to vector<128x128xbf16>
    %cst_48 = arith.constant dense<0.000000e+00> : vector<16x128xf32>
    %71 = tpu.matmul %68, %70, %cst_48 {dimension_numbers = #tpu.dot_dimension_numbers<[1], [0], [0], [1], [0, 0, 1, 1], [], []>} : vector<16x128xbf16>, vector<128x128xbf16>, vector<16x128xf32> -> vector<16x128xf32>
    %c0_49 = arith.constant 0 : index
    %c0_50 = arith.constant 0 : index
    %c0_51 = arith.constant 0 : index
    %72 = vector.load %arg4[%c0_49, %c0_50, %c0_51] : memref<3x128x128xbf16, #tpu.memory_space<vmem>>, vector<1x128x128xbf16>
    %73 = vector.shape_cast %72 : vector<1x128x128xbf16> to vector<128x128xbf16>
    %cst_52 = arith.constant dense<0.000000e+00> : vector<16x128xf32>
    %74 = tpu.matmul %68, %73, %cst_52 {dimension_numbers = #tpu.dot_dimension_numbers<[1], [0], [0], [1], [0, 0, 1, 1], [], []>} : vector<16x128xbf16>, vector<128x128xbf16>, vector<16x128xf32> -> vector<16x128xf32>
    %c2_53 = arith.constant 2 : index
    %c0_54 = arith.constant 0 : index
    %c0_55 = arith.constant 0 : index
    %75 = vector.load %arg4[%c2_53, %c0_54, %c0_55] : memref<3x128x128xbf16, #tpu.memory_space<vmem>>, vector<1x128x128xbf16>
    %76 = vector.shape_cast %75 : vector<1x128x128xbf16> to vector<128x128xbf16>
    %cst_56 = arith.constant dense<0.000000e+00> : vector<16x128xf32>
    %77 = tpu.matmul %68, %76, %cst_56 {dimension_numbers = #tpu.dot_dimension_numbers<[1], [0], [0], [1], [0, 0, 1, 1], [], []>} : vector<16x128xbf16>, vector<128x128xbf16>, vector<16x128xf32> -> vector<16x128xf32>
    %c1_i32_57 = arith.constant 1 : i32
    %78 = tpu.dynamic_rotate %74 by %c1_i32_57 dim 0 : vector<16x128xf32>, i32 -> vector<16x128xf32>
    %cst_58 = arith.constant 0.000000e+00 : f32
    %79 = vector.broadcast %cst_58 : f32 to vector<16x128xf32>
    %80 = arith.select %18, %78, %79 : vector<16x128xi1>, vector<16x128xf32>
    %81 = arith.addf %71, %80 : vector<16x128xf32>
    %c15_i32_59 = arith.constant 15 : i32
    %82 = tpu.dynamic_rotate %77 by %c15_i32_59 dim 0 : vector<16x128xf32>, i32 -> vector<16x128xf32>
    %cst_60 = arith.constant 0.000000e+00 : f32
    %83 = vector.broadcast %cst_60 : f32 to vector<16x128xf32>
    %84 = arith.select %20, %82, %83 : vector<16x128xi1>, vector<16x128xf32>
    %85 = arith.addf %81, %84 : vector<16x128xf32>
    %c0_61 = arith.constant 0 : index
    %c0_62 = arith.constant 0 : index
    %86 = vector.load %arg5[%c0_61, %c0_62] : memref<1x128xf32, #tpu.memory_space<vmem>>, vector<1x128xf32>
    %87 = vector.broadcast %86 : vector<1x128xf32> to vector<16x128xf32>
    %88 = arith.addf %85, %87 : vector<16x128xf32>
    %cst_63 = arith.constant 0.000000e+00 : f32
    %89 = vector.broadcast %cst_63 : f32 to vector<16x128xf32>
    %90 = arith.maximumf %88, %89 : vector<16x128xf32>
    %c0_64 = arith.constant 0 : index
    %c0_65 = arith.constant 0 : index
    %91 = vector.load %arg14[%c0_64, %c0_65] : memref<16x128xf32, #tpu.memory_space<vmem>>, vector<16x128xf32>
    tpu.vector_store %arg14[%c0_64, %c0_65], %90 {strides = array<i32>} : memref<16x128xf32, #tpu.memory_space<vmem>>, vector<16x128xf32>,
    return
  }
  func.func @transform_0(%arg0: i32) -> (i32, i32) {
    %c0_i32 = arith.constant 0 : i32
    %c0_i32_0 = arith.constant 0 : i32
    return %arg0, %c0_i32 : i32, i32
  }
  func.func @transform_1(%arg0: i32) -> (i32, i32, i32) {
    %c0_i32 = arith.constant 0 : i32
    %c0_i32_0 = arith.constant 0 : i32
    %c0_i32_1 = arith.constant 0 : i32
    %c0_i32_2 = arith.constant 0 : i32
    return %c0_i32, %c0_i32_0, %c0_i32_1 : i32, i32, i32
  }
  func.func @transform_2(%arg0: i32) -> (i32, i32) {
    %c0_i32 = arith.constant 0 : i32
    %c0_i32_0 = arith.constant 0 : i32
    %c0_i32_1 = arith.constant 0 : i32
    return %c0_i32, %c0_i32_0 : i32, i32
  }
  func.func @transform_3(%arg0: i32) -> (i32, i32, i32) {
    %c0_i32 = arith.constant 0 : i32
    %c0_i32_0 = arith.constant 0 : i32
    %c0_i32_1 = arith.constant 0 : i32
    %c0_i32_2 = arith.constant 0 : i32
    return %c0_i32, %c0_i32_0, %c0_i32_1 : i32, i32, i32
  }
  func.func @transform_4(%arg0: i32) -> (i32, i32) {
    %c0_i32 = arith.constant 0 : i32
    %c0_i32_0 = arith.constant 0 : i32
    %c0_i32_1 = arith.constant 0 : i32
    return %c0_i32, %c0_i32_0 : i32, i32
  }
  func.func @transform_5(%arg0: i32) -> (i32, i32) {
    %c0_i32 = arith.constant 0 : i32
    %c0_i32_0 = arith.constant 0 : i32
    %c0_i32_1 = arith.constant 0 : i32
    return %c0_i32, %c0_i32_0 : i32, i32
  }
  func.func @transform_6(%arg0: i32) -> (i32, i32) {
    %c0_i32 = arith.constant 0 : i32
    %c0_i32_0 = arith.constant 0 : i32
    %c0_i32_1 = arith.constant 0 : i32
    return %c0_i32, %c0_i32_0 : i32, i32
  }
  func.func @transform_7(%arg0: i32) -> (i32, i32) {
    %c0_i32 = arith.constant 0 : i32
    %c0_i32_0 = arith.constant 0 : i32
    %c0_i32_1 = arith.constant 0 : i32
    return %c0_i32, %c0_i32_0 : i32, i32
  }
  func.func @transform_8(%arg0: i32) -> (i32, i32) {
    %c0_i32 = arith.constant 0 : i32
    %c0_i32_0 = arith.constant 0 : i32
    %c0_i32_1 = arith.constant 0 : i32
    return %c0_i32, %c0_i32_0 : i32, i32
  }
  func.func @transform_9(%arg0: i32) -> (i32, i32) {
    %c0_i32 = arith.constant 0 : i32
    %c0_i32_0 = arith.constant 0 : i32
    %c0_i32_1 = arith.constant 0 : i32
    return %c0_i32, %c0_i32_0 : i32, i32
  }
  func.func @transform_10(%arg0: i32) -> (i32, i32) {
    %c0_i32 = arith.constant 0 : i32
    %c0_i32_0 = arith.constant 0 : i32
    %c0_i32_1 = arith.constant 0 : i32
    return %c0_i32, %c0_i32_0 : i32, i32
  }
  func.func @transform_11(%arg0: i32) -> (i32, i32) {
    %c0_i32 = arith.constant 0 : i32
    %c0_i32_0 = arith.constant 0 : i32
    %c0_i32_1 = arith.constant 0 : i32
    return %c0_i32, %c0_i32_0 : i32, i32
  }
  func.func @transform_12(%arg0: i32) -> (i32, i32) {
    %c0_i32 = arith.constant 0 : i32
    %c0_i32_0 = arith.constant 0 : i32
    %c0_i32_1 = arith.constant 0 : i32
    return %c0_i32, %c0_i32_0 : i32, i32
  }
  func.func @transform_13(%arg0: i32) -> (i32, i32) {
    %c0_i32 = arith.constant 0 : i32
    %c0_i32_0 = arith.constant 0 : i32
    return %arg0, %c0_i32 : i32, i32
  }
}

</mosaic_0001>

<bundles_post_ra>
// kernel: custom_block_forward.1
= control target key start
LH: loop header
LB: loop body
LE: loop exit
PB: predicated region body
PF: predicated region fallthrough
CT: control target
= control target key end

     0   :  { %s2123_s25 = smov 0   ;;  %s2459_s0 = inlined_call_operand.vmem [shape: bf16[32,64], index: 0, kind: input, shape index: {}]   ;;  %s2460_s1 = inlined_call_operand.vmem [shape: bf16[3,64,128], index: 1, kind: input, shape index: {}]   ;;  %s2461_s2 = inlined_call_operand.vmem [shape: f32[1,128], index: 2, kind: input, shape index: {}]   ;;  %s2462_s3 = inlined_call_operand.vmem [shape: bf16[3,128,128], index: 3, kind: input, shape index: {}]   ;;  %s2463_s4 = inlined_call_operand.vmem [shape: f32[1,128], index: 4, kind: input, shape index: {}]   ;;  %s2464_s5 = inlined_call_operand.vmem [shape: f32[1,16], index: 5, kind: input, shape index: {}]   ;;  %s2465_s6 = inlined_call_operand.vmem [shape: f32[128,8], index: 6, kind: input, shape index: {}]   ;;  %s2466_s7 = inlined_call_operand.vmem [shape: f32[8,4], index: 7, kind: input, shape index: {}]   ;;  %s2467_s8 = inlined_call_operand.vmem [shape: f32[1,4], index: 8, kind: input, shape index: {}]   ;;  %s2468_s9 = inlined_call_operand.vmem [shape: f32[4,8], index: 9, kind: input, shape index: {}]   ;;  %s2469_s10 = inlined_call_operand.vmem [shape: f32[1,8], index: 10, kind: input, shape index: {}]   ;;  %s2470_s11 = inlined_call_operand.vmem [shape: f32[8,128], index: 11, kind: input, shape index: {}]   ;;  %s2471_s12 = inlined_call_operand.vmem [shape: f32[16,1], index: 12, kind: input, shape index: {}]   ;;  %s2472_s13 = inlined_call_operand.vmem [shape: f32[32,128], index: 13, kind: output, shape index: {}]  }
   0x1 LB: > { %s1624_s26 = sadd.s32 4294967295, %s2048_s25   ;;  %p1628_p0 = scmp.ge.s32.totalorder %s2048_s25, 1  ;;  %s2048_s25 = sphi %s2123_s25, %s23_s25  }
   0x2   : > { %p388_p1 = scmp.lt.s32.totalorder %s2048_s25, 3 }
   0x4   : > { %p389_p2 = pnand %p1628_p0, %p388_p1 }
   0x5   : > { %v2001_v0 = vld [vmem:[%s2460_s1] sm:$0xff] (!%p389_p2)   ;;  %v2050_v1 = vmov (!%p389_p2), 0.0   ;;  %v2003_v3 = vld [vmem:[%s2460_s1 + $0x8] sm:$0xff] (!%p389_p2)   ;;  %vm2051_vm0 = vmmov (!%p389_p2), 0   ;;  %s1629_s16 = sshll.u32 (!%p389_p2), %s1624_s26, 1  ;;  %v2005_v5 = vld [vmem:[%s2460_s1 + $0x10] sm:$0xff] (!%p389_p2)   ;;  %v445_v15 = vlaneseq (!%p389_p2) }
   0x6   : > { %392 = sbr.rel (%p389_p2) target bundleno = 1833 (0x729), region = 72  ;;  %1805 = vmatprep.subr.bf16.mxu1 (!%p389_p2), %v2050_v1  ;;  %1829 = vmatprep.subr.bf16.mxu0 (!%p389_p2), %v2050_v1  ;;  %v2002_v2 = vld [vmem:[%s2460_s1 + $0x20] sm:$0xff] (!%p389_p2)   ;;  %v2004_v4 = vld [vmem:[%s2460_s1 + $0x28] sm:$0xff] (!%p389_p2)   ;;  %p433_p3 = scmp.lt.s32.totalorder (!%p389_p2), %s1629_s16, 3  ;;  %v2006_v6 = vld [vmem:[%s2460_s1 + $0x30] sm:$0xff] (!%p389_p2)   ;;  %vm524_vm1 = vcmask (!%p389_p2), 523264  }
   0x7   : > { %1806 = vmatpush3.bf16.msra.mxu1 (!%p389_p2), %v2001_v0  ;;  %1813 = vmatprep.mubr.msk.bf16.mxu1 (!%p389_p2), %vm2051_vm0, %v2050_v1  ;;  %v2007_v7 = vld [vmem:[%s2460_s1 + $0x18] sm:$0xff] (!%p389_p2)   ;;  %v2010_v10 = vld [vmem:[%s2460_s1 + $0x40] sm:$0xff] (!%p389_p2)   ;;  %v2011_v11 = vld [vmem:[%s2460_s1 + $0x48] sm:$0xff] (!%p389_p2)   ;;  %v2052_v14 = vmov (!%p389_p2), 0.0|0.0   ;;  %v2200_v16 = vshrl.u32 (!%p389_p2), %v445_v15, 7  ;;  %vm736_vm6 = vcmask (!%p389_p2), 130048  }
   0x8   : > { %1807 = vmatprep.subr.bf16.mxu1 (!%p389_p2), %v2050_v1  ;;  %1830 = vmatpush3.bf16.msra.mxu0 (!%p389_p2), %v2002_v2  ;;  %v2009_v8 = vld [vmem:[%s2460_s1 + $0x38] sm:$0xff] (!%p389_p2)   ;;  %v2012_v12 = vld [vmem:[%s2460_s1 + $0x50] sm:$0xff] (!%p389_p2)   ;;  %v1665_v45 = vld [vmem:[%s2461_s2] ss:$0 sm:$0xff] (!%p389_p2)  ;;  %vm898_vm7 = vcmask (!%p389_p2), 64512   ;;  %vm979_vm8 = vcmask (!%p389_p2), 1043456  }
   0x9   : > { %1831 = vmatprep.subr.bf16.mxu0 (!%p389_p2), %v2050_v1  ;;  %1837 = vmatprep.mubr.msk.bf16.mxu0 (!%p389_p2), %vm2051_vm0, %v2050_v1  ;;  %v2013_v13 = vld [vmem:[%s2460_s1 + $0x58] sm:$0xff] (!%p389_p2)   ;;  %v452_v17 = vand.u32 (!%p389_p2), 15, %v2200_v16  ;;  %vm645_vm2 = vcmp.lt.s32.totalorder (!%p389_p2), %v2200_v16, 1  ;;  %v447_v34 = vadd.s32 (!%p389_p2), 8, %v2200_v16  ;;  %vm717_vm4 = vcmp.lt.s32.totalorder (!%p389_p2), %v2200_v16, 7  ;;  %v810_v53 = vld [vmem:[%s2465_s6] sm:$0xff] (!%p389_p2) }
   0xa   : > { %v811_v54 = vld [vmem:[%s2465_s6 + $0x8] sm:$0xff] (!%p389_p2)  ;;  %v735_v56 = vld [vmem:[%s2464_s5] sm:$0x1] (!%p389_p2)  ;;  %v812_v58 = vld [vmem:[%s2465_s6 + $0x10] sm:$0xff] (!%p389_p2)  ;;  %vm975_vm9 = vcmask (!%p389_p2), 31744   ;;  %vm1135_vm10 = vcmask (!%p389_p2), 7168  }
   0xb   : > { %1808 = vmatpush3.bf16.msra.mxu1 (!%p389_p2), %v2003_v3  ;;  %vm2204_vm3 = vcmp.ge.s32.totalorder (!%p389_p2), %v452_v17, 1  ;;  %v459_v35 = vand.u32 (!%p389_p2), 15, %v447_v34  ;;  %v1967_v57 = vpack.c.bf16 (!%p389_p2), %v811_v54, %v810_v53  ;;  %v813_v59 = vld [vmem:[%s2465_s6 + $0x18] sm:$0xff] (!%p389_p2)  ;;  %v814_v61 = vld [vmem:[%s2465_s6 + $0x20] sm:$0xff] (!%p389_p2)  ;;  %v815_v62 = vld [vmem:[%s2465_s6 + $0x28] sm:$0xff] (!%p389_p2)  ;;  %vm1142_vm11 = vcmask (!%p389_p2), 1040384  }
   0xc   : > { %1809 = vmatprep.subr.bf16.mxu1 (!%p389_p2), %v2050_v1  ;;  %1832 = vmatpush3.bf16.msra.mxu0 (!%p389_p2), %v2004_v4  ;;  %v1970_v60 = vpack.c.bf16 (!%p389_p2), %v813_v59, %v812_v58  ;;  %v1973_v63 = vpack.c.bf16 (!%p389_p2), %v815_v62, %v814_v61  ;;  %v816_v0 = vld [vmem:[%s2465_s6 + $0x30] sm:$0xff] (!%p389_p2)  ;;  %v817_v2 = vld [vmem:[%s2465_s6 + $0x38] sm:$0xff] (!%p389_p2)  ;;  %v818_v4 = vld [vmem:[%s2465_s6 + $0x40] sm:$0xff] (!%p389_p2) }
   0xd   : > { %s2478_s16 = smov (!%p433_p3, %s1629_s16), 3  ;;  %1833 = vmatprep.subr.bf16.mxu0 %v2050_v1  ;;  %vm2216_vm5 = vcmp.lt.s32.totalorder %v459_v35, 15  ;;  %v1976_v3 = vpack.c.bf16 %v817_v2, %v816_v0  ;;  %v825_v15 = vld [vmem:[%s2465_s6 + $0x78] sm:$0xff]  ;;  %v2014_v53 = vld [vmem:[%s2462_s3] sm:$0xff]   ;;  %v2024_v59 = vld [vmem:[%s2462_s3 + $0x28] sm:$0xff]  }
   0xe   : > { %s1630_s23 = sshll.u32 %s2478_s16, 2  ;;  %v2022_v58 = vld [vmem:[%s2462_s3 + $0x20] sm:$0xff]   ;;  %v2028_v61 = vld [vmem:[%s2462_s3 + $0x38] sm:$0xff]   ;;  %s1632_s19 = sshll.u32 %s2478_s16, 3 }
   0xf   : > { %s436_s27 = scalar_lea.vmem %s2459_s0, %s1630_s23  ;;  %1810 = vmatpush3.bf16.msra.mxu1 %v2005_v5  ;;  %v819_v5 = vld [vmem:[%s2465_s6 + $0x48] sm:$0xff]  ;;  %v2029_v62 = vld [vmem:[%s2462_s3 + $0xb8] sm:$0xff]   ;;  %s442_s22 = scalar_lea.vmem %s2472_s13, %s1632_s19 }
  0x10   : > { %1811 = vmatprep.subr.bf16.mxu1 %v2050_v1  ;;  %1834 = vmatpush3.bf16.msra.mxu0 %v2006_v6  ;;  %v2008_v9 = vld [vmem:[%s436_s27] sm:$0xff]   ;;  %v1979_v6 = vpack.c.bf16 %v819_v5, %v818_v4 }
  0x11   : > { %1835 = vmatprep.subr.bf16.mxu0 %v2050_v1  ;;  %v2030_v4 = vld [vmem:[%s2462_s3 + $0x40] sm:$0xff]  }
  0x13   : > { %1812 = vmatpush3.bf16.msra.mxu1 %v2007_v7  ;;  %v820_v7 = vld [vmem:[%s2465_s6 + $0x50] sm:$0xff] }
  0x14   : > { %1817 = vmatprep.subr.bf16.mxu1 %v2050_v1  ;;  %1836 = vmatpush3.bf16.msra.mxu0 %v2009_v8  ;;  %v821_v8 = vld [vmem:[%s2465_s6 + $0x58] sm:$0xff] }
  0x15   : > { %1883 = vmatprep.subr.mxu0 %v2050_v1 }
  0x16   : > { %1814 = vmatmul.mubr.msk.bf16.vlgmr.msra.gmra.mrb[0].mxu1 %vm524_vm1, %v2008_v9 }
  0x17   : > { %1818 = vmatpush3.bf16.msra.mxu1 %v2010_v10  ;;  %1838 = vmatmul.mubr.msk.bf16.vlgmr.msra.gmra.mrb[0].mxu0 %vm524_vm1, %v2008_v9  ;;  %v822_v10 = vld [vmem:[%s2465_s6 + $0x60] sm:$0xff] }
  0x18   : > { %1819 = vmatprep.subr.bf16.mxu1 %v2050_v1  ;;  %1825 = vmatprep.mubr.msk.bf16.mxu1 %vm2051_vm0, %v2050_v1 }
  0x19   : > { %1885 = vmatprep.mubr.msk.f32.mxu0 %vm2051_vm0, %v2050_v1 }
  0x1b   : > { %1820 = vmatpush3.bf16.msra.mxu1 %v2011_v11  ;;  %v823_v11 = vld [vmem:[%s2465_s6 + $0x68] sm:$0xff] }
  0x1c   : > { %1821 = vmatprep.subr.bf16.mxu1 %v2050_v1 }
  0x1f   : > { %1822 = vmatpush3.bf16.msra.mxu1 %v2012_v12  ;;  %v1985_v12 = vpack.c.bf16 %v823_v11, %v822_v10 }
  0x20   : > { %1823 = vmatprep.subr.bf16.mxu1 %v2050_v1 }
  0x23   : > { %1824 = vmatpush3.bf16.msra.mxu1 %v2013_v13  ;;  %v824_v13 = vld [vmem:[%s2465_s6 + $0x70] sm:$0xff] }
  0x24   : > { %1963 = vmatprep.subr.bf16.mxu1 %v2052_v14  ;;  %v1988_v17 = vpack.c.bf16 %v825_v15, %v824_v13 }
  0x26   : > { %1826 = vmatmul.mubr.msk.bf16.vlgmr.msra.gmra.mrb[4].mxu1 %vm524_vm1, %v2008_v9  ;;  %v1982_v9 = vpack.c.bf16 %v821_v8, %v820_v7  ;;  %v2036_v7 = vld [vmem:[%s2462_s3 + $0x70] sm:$0xff]   ;;  %v2037_v8 = vld [vmem:[%s2462_s3 + $0x78] sm:$0xff]  }
  0x27   : > { %1845 = vmatprep.mubr.msk.f32.mxu1 %vm2051_vm0, %v2050_v1 }
  0xe9   : > { %v562_v18 = vpop.f32.mrb[0].mxu1 }
  0xea   : > { %v643_v19 = vrot.slane %v562_v18, 7  ;;  %v1815_v20 = vpop.f32.mrb[1].mxu1  ;;  %v708_v21 = vpop.f32.mrb[0].mxu0  ;;  %v896_v18 = vld [vmem:[%s2466_s7] sm:$0xff] }
  0xeb   : > { %v565_v22 = vpop.f32.mrb[2].mxu1  ;;  %v1839_v23 = vpop.f32.mrb[1].mxu0  ;;  %1884 = vmatpush3.msra.mxu0 %v896_v18 }
  0xec   : > { %v644_v24 = vrot.slane %v565_v22, 7  ;;  %v1816_v25 = vpop.f32.mrb[3].mxu1  ;;  %v711_v27 = vpop.f32.mrb[2].mxu0  ;;  %1888 = vmatprep.subr.mxu0 %v2050_v1  ;;  %v973_v22 = vld [vmem:[%s2468_s9] sm:$0xf] }
  0xed   : > { %v1840_v28 = vpop.f32.mrb[3].mxu0  ;;  %v897_v23 = vld [vmem:[%s2467_s8] sm:$0x1] }
  0xee   : > { %v647_v29 = vsel %vm645_vm2, %v644_v24, %v643_v19  ;;  %v646_v30 = vsel %vm645_vm2, %v643_v19, %v644_v24 }
  0xef   : > { %v648_v31 = vsel %vm2204_vm3, %v647_v29, 0.0  ;;  %v712_v32 = vadd.f32 %v711_v27, %v646_v30  ;;  %v1059_v29 = vld [vmem:[%s2470_s11] sm:$0xff] }
  0xf0   : > { %v709_v33 = vadd.f32 %v708_v21, %v648_v31  ;;  %v974_v30 = vld [vmem:[%s2469_s10] sm:$0x1] }
  0xf9   : > { %v636_v36 = vpop.f32.mrb[4].mxu1 }
  0xfa   : > { %v1827_v37 = vpop.f32.mrb[5].mxu1  ;;  %v715_v39 = vrot.slane %v636_v36, 1 }
  0xfb   : > { %v639_v38 = vpop.f32.mrb[6].mxu1 }
  0xfc   : > { %v716_v41 = vrot.slane %v639_v38, 1  ;;  %v1828_v42 = vpop.f32.mrb[7].mxu1  ;;  %v1133_v38 = vld [vmem:[%s2471_s12] sm:$0xff] }
  0xfd   : > { %v2019_v42 = vld [vmem:[%s2462_s3 + $0x90] sm:$0xff]  }
  0xfe   : > { %v718_v43 = vsel %vm717_vm4, %v715_v39, %v716_v41  ;;  %v719_v44 = vsel %vm717_vm4, %v716_v41, %v715_v39  ;;  %v2015_v39 = vld [vmem:[%s2462_s3 + $0x80] sm:$0xff]   ;;  %v2017_v41 = vld [vmem:[%s2462_s3 + $0x88] sm:$0xff]  }
  0xff   : > { %v721_v46 = vsel %vm2216_vm5, %v719_v44, 0.0  ;;  %v722_v47 = vadd.f32 %v718_v43, %v709_v33  ;;  %v2021_v43 = vld [vmem:[%s2462_s3 + $0x98] sm:$0xff]   ;;  %v2023_v44 = vld [vmem:[%s2462_s3 + $0xa0] sm:$0xff]  }
 0x100   : > { %v723_v48 = vadd.f32 %v721_v46, %v712_v32  ;;  %v2027_v46 = vld [vmem:[%s2462_s3 + $0xb0] sm:$0xff]  }
 0x101   : > { %v2229_v49 = vadd.f32 %v1665_v45, %v722_v47 }
 0x102   : > { %v2231_v50 = vadd.f32 %v1665_v45, %v723_v48  ;;  %v2025_v45 = vld [vmem:[%s2462_s3 + $0xa8] sm:$0xff]  }
 0x103   : > { %v733_v51 = vmax.f32 %v2229_v49, 0.0  ;;  %v1134_v48 = vld [vmem:[%s2471_s12 + $0x8] sm:$0xff]  ;;  %v2032_v49 = vld [vmem:[%s2462_s3 + $0x50] sm:$0xff]  }
 0x104   : > { %v734_v52 = vmax.f32 %v2231_v50, 0.0  ;;  %v2033_v50 = vld [vmem:[%s2462_s3 + $0x58] sm:$0xff]  }
 0x106   : > { %v1964_v55 = vpack.c.bf16 %v734_v52, %v733_v51 }
 0x108   : > { %1965 = vmatpush3.bf16.msra.mxu1 %v1964_v55  ;;  %v2016_v55 = vld [vmem:[%s2462_s3 + $0x8] sm:$0xff]  }
 0x109   : > { %1966 = vmatprep.subr.bf16.mxu1 %v2052_v14 }
 0x10b   : > { %1846 = vmatmul.mubr.msk.f32.vlgmr.msra.gmra.mrb[8].mxu1 %vm736_vm6, %v735_v56  ;;  %v2018_v56 = vld [vmem:[%s2462_s3 + $0x10] sm:$0xff]  }
 0x10c   : > { %1968 = vmatpush3.bf16.msra.mxu1 %v1967_v57  ;;  %1880 = vmatprep.mubr.msk.f32.mxu1 %vm2051_vm0, %v2050_v1  ;;  %v2020_v57 = vld [vmem:[%s2462_s3 + $0x18] sm:$0xff]  }
 0x10d   : > { %1969 = vmatprep.subr.bf16.mxu1 %v2052_v14 }
 0x110   : > { %1971 = vmatpush3.bf16.msra.mxu1 %v1970_v60  ;;  %v2026_v60 = vld [vmem:[%s2462_s3 + $0x30] sm:$0xff]  }
 0x111   : > { %1972 = vmatprep.subr.bf16.mxu1 %v2052_v14 }
 0x114   : > { %1974 = vmatpush3.bf16.msra.mxu1 %v1973_v63 }
 0x115   : > { %1975 = vmatprep.subr.bf16.mxu1 %v2052_v14 }
 0x118   : > { %1977 = vmatpush3.bf16.msra.mxu1 %v1976_v3 }
 0x119   : > { %1978 = vmatprep.subr.bf16.mxu1 %v2052_v14 }
 0x11c   : > { %1980 = vmatpush3.bf16.msra.mxu1 %v1979_v6  ;;  %v2031_v6 = vld [vmem:[%s2462_s3 + $0x48] sm:$0xff]  }
 0x11d   : > { %1981 = vmatprep.subr.bf16.mxu1 %v2052_v14 }
 0x120   : > { %1983 = vmatpush3.bf16.msra.mxu1 %v1982_v9 }
 0x121   : > { %1984 = vmatprep.subr.bf16.mxu1 %v2052_v14 }
 0x124   : > { %1986 = vmatpush3.bf16.msra.mxu1 %v1985_v12 }
 0x125   : > { %1987 = vmatprep.subr.bf16.mxu1 %v2052_v14 }
 0x128   : > { %1989 = vmatpush3.bf16.msra.mxu1 %v1988_v17 }
 0x129   : > { %1923 = vmatprep.subr.bf16.mxu1 %v2050_v1 }
 0x1de   : > { %v806_v19 = vpop.f32.mrb[8].mxu1 }
 0x1df   : > { %1881 = vmatmul.mubr.f32.vlgmr.msra.gmra.mrb[10].mxu1 %v806_v19  ;;  %v1847_v20 = vpop.f32.mrb[9].mxu1 }
 0x1e0   : > { %1939 = vmatprep.mubr.msk.bf16.mxu1 %vm2051_vm0, %v2050_v1  ;;  %1924 = vmatpush3.bf16.msra.mxu1 %v2015_v39 }
 0x1e1   : > { %1925 = vmatprep.subr.bf16.mxu1 %v2050_v1 }
 0x1e4   : > { %1926 = vmatpush3.bf16.msra.mxu1 %v2017_v41 }
 0x1e5   : > { %1927 = vmatprep.subr.bf16.mxu1 %v2050_v1 }
 0x1e8   : > { %1928 = vmatpush3.bf16.msra.mxu1 %v2019_v42 }
 0x1e9   : > { %1929 = vmatprep.subr.bf16.mxu1 %v2050_v1 }
 0x1ec   : > { %1930 = vmatpush3.bf16.msra.mxu1 %v2021_v43 }
 0x1ed   : > { %1931 = vmatprep.subr.bf16.mxu1 %v2050_v1 }
 0x1f0   : > { %1932 = vmatpush3.bf16.msra.mxu1 %v2023_v44 }
 0x1f1   : > { %1933 = vmatprep.subr.bf16.mxu1 %v2050_v1 }
 0x1f4   : > { %1934 = vmatpush3.bf16.msra.mxu1 %v2025_v45 }
 0x1f5   : > { %1935 = vmatprep.subr.bf16.mxu1 %v2050_v1 }
 0x1f8   : > { %1936 = vmatpush3.bf16.msra.mxu1 %v2027_v46 }
 0x1f9   : > { %1937 = vmatprep.subr.bf16.mxu1 %v2050_v1 }
 0x1fc   : > { %1938 = vmatpush3.bf16.msra.mxu1 %v2029_v62 }
 0x2b2   : > { %v892_v21 = vpop.f32.mrb[10].mxu1 }
 0x2b3   : > { %1886 = vmatmul.mubr.msk.f32.vlgmr.msra.gmra.mrb[4].mxu0 %vm898_vm7, %v892_v21  ;;  %v1882_v14 = vpop.f32.mrb[11].mxu1 }
 0x2b4   : > { %1890 = vmatprep.mubr.msk.f32.mxu0 %vm2051_vm0, %v2050_v1  ;;  %1889 = vmatpush3.msk.msra.mxu0 %vm979_vm8, %v973_v22 }
 0x2b5   : > { %1893 = vmatprep.subr.mxu0 %v2050_v1 }
 0x386   : > { %v968_v24 = vpop.f32.mrb[4].mxu0 }
 0x387   : > { %v969_v25 = vadd.f32 %v968_v24, %v897_v23  ;;  %v1887_v27 = vpop.f32.mrb[5].mxu0 }
 0x389   : > { %v972_v28 = vmax.f32 %v969_v25, 0.0 }
 0x38b   : > { %1891 = vmatmul.mubr.msk.f32.vlgmr.msra.gmra.mrb[6].mxu0 %vm975_vm9, %v972_v28 }
 0x38c   : > { %1895 = vmatprep.mubr.msk.f32.mxu0 %vm2051_vm0, %v2050_v1  ;;  %1894 = vmatpush3.msra.mxu0 %v1059_v29 }
 0x45e   : > { %v1049_v31 = vpop.f32.mrb[6].mxu0 }
 0x45f   : > { %v1050_v32 = vadd.f32 %v1049_v31, %v974_v30  ;;  %v1892_v33 = vpop.f32.mrb[7].mxu0  ;;  %v1731_v30 = vld [vmem:[%s2463_s4] ss:$0 sm:$0xff] }
 0x461   : > { %v1670_v34 = vmul.f32 -1.442695, %v1050_v32 }
 0x463   : > { %2038 = vpow2.f32 %v1670_v34 }
 0x46d   : > { %v2039_v35 = vpop.eup %2038 }
 0x46e   : > { %v1056_v36 = vadd.f32 1.0, %v2039_v35 }
 0x470   : > { %2040 = vrcp.f32 %v1056_v36 }
 0x47a   : > { %v2041_v37 = vpop.eup %2040 }
 0x47b   : > { %1896 = vmatmul.mubr.msk.f32.vlgmr.msra.gmra.mrb[8].mxu0 %vm898_vm7, %v2041_v37 }
 0x47c   : > { %1900 = vmatprep.mubr.msk.f32.mxu0 %vm1135_vm10, %v1133_v38 }
 0x54e   : > { %v1129_v47 = vpop.f32.mrb[8].mxu0 }
 0x54f   : > { %1898 = vmatprep.subr.msk.mxu0 %vm1142_vm11, %v1129_v47  ;;  %v1897_v54 = vpop.f32.mrb[9].mxu0 }
 0x550   : > { %1899 = vmatpush3.msk.msra.mxu0 %vm1142_vm11, %v1129_v47 }
 0x551   : > { %1901 = vmatmul.mubr.msk.f32.vlgmr.msra.gmra.mrb[10].mxu0 %vm1135_vm10, %v1134_v48  ;;  %1903 = vmatprep.subr.bf16.mxu0 %v2050_v1 }
 0x552   : > { %1904 = vmatpush3.bf16.msra.mxu0 %v2014_v53  ;;  %1919 = vmatprep.mubr.msk.bf16.mxu0 %vm2051_vm0, %v2050_v1 }
 0x553   : > { %1905 = vmatprep.subr.bf16.mxu0 %v2050_v1 }
 0x556   : > { %1906 = vmatpush3.bf16.msra.mxu0 %v2016_v55 }
 0x557   : > { %1907 = vmatprep.subr.bf16.mxu0 %v2050_v1 }
 0x55a   : > { %1908 = vmatpush3.bf16.msra.mxu0 %v2018_v56 }
 0x55b   : > { %1909 = vmatprep.subr.bf16.mxu0 %v2050_v1 }
 0x55e   : > { %1910 = vmatpush3.bf16.msra.mxu0 %v2020_v57 }
 0x55f   : > { %1911 = vmatprep.subr.bf16.mxu0 %v2050_v1 }
 0x562   : > { %1912 = vmatpush3.bf16.msra.mxu0 %v2022_v58 }
 0x563   : > { %1913 = vmatprep.subr.bf16.mxu0 %v2050_v1 }
 0x566   : > { %1914 = vmatpush3.bf16.msra.mxu0 %v2024_v59 }
 0x567   : > { %1915 = vmatprep.subr.bf16.mxu0 %v2050_v1 }
 0x56a   : > { %1916 = vmatpush3.bf16.msra.mxu0 %v2026_v60 }
 0x56b   : > { %1917 = vmatprep.subr.bf16.mxu0 %v2050_v1 }
 0x56e   : > { %1918 = vmatpush3.bf16.msra.mxu0 %v2028_v61 }
 0x56f   : > { %1943 = vmatprep.subr.bf16.mxu0 %v2050_v1 }
 0x624   : > { %v1902_v63 = vpop.f32.mrb[10].mxu0 }
 0x625   : > { %v1222_v0 = vmul.f32 %v1902_v63, %v734_v52  ;;  %v1212_v2 = vpop.f32.mrb[11].mxu0  ;;  %v2035_v52 = vld [vmem:[%s2462_s3 + $0x68] sm:$0xff]  }
 0x626   : > { %v1221_v3 = vmul.f32 %v1212_v2, %v733_v51  ;;  %v2034_v51 = vld [vmem:[%s2462_s3 + $0x60] sm:$0xff]  }
 0x628   : > { %v1223_v5 = vpack.c.bf16 %v1222_v0, %v1221_v3 }
 0x62a   : > { %1920 = vmatmul.mubr.bf16.vlgmr.msra.gmra.mrb[12].mxu0 %v1223_v5  ;;  %1940 = vmatmul.mubr.bf16.vlgmr.msra.gmra.mrb[12].mxu1 %v1223_v5 }
 0x62b   : > { %1944 = vmatpush3.bf16.msra.mxu0 %v2030_v4  ;;  %1959 = vmatprep.mubr.msk.bf16.mxu0 %vm2051_vm0, %v2050_v1 }
 0x62c   : > { %1945 = vmatprep.subr.bf16.mxu0 %v2050_v1 }
 0x62f   : > { %1946 = vmatpush3.bf16.msra.mxu0 %v2031_v6 }
 0x630   : > { %1947 = vmatprep.subr.bf16.mxu0 %v2050_v1 }
 0x633   : > { %1948 = vmatpush3.bf16.msra.mxu0 %v2032_v49 }
 0x634   : > { %1949 = vmatprep.subr.bf16.mxu0 %v2050_v1 }
 0x637   : > { %1950 = vmatpush3.bf16.msra.mxu0 %v2033_v50 }
 0x638   : > { %1951 = vmatprep.subr.bf16.mxu0 %v2050_v1 }
 0x63b   : > { %1952 = vmatpush3.bf16.msra.mxu0 %v2034_v51 }
 0x63c   : > { %1953 = vmatprep.subr.bf16.mxu0 %v2050_v1 }
 0x63f   : > { %1954 = vmatpush3.bf16.msra.mxu0 %v2035_v52 }
 0x640   : > { %1955 = vmatprep.subr.bf16.mxu0 %v2050_v1 }
 0x643   : > { %1956 = vmatpush3.bf16.msra.mxu0 %v2036_v7 }
 0x644   : > { %1957 = vmatprep.subr.bf16.mxu0 %v2050_v1 }
 0x647   : > { %1958 = vmatpush3.bf16.msra.mxu0 %v2037_v8 }
 0x64a   : > { %1960 = vmatmul.mubr.bf16.vlgmr.msra.gmra.mrb[16].mxu0 %v1223_v5 }
 0x6fd   : > { %v1339_v9 = vpop.f32.mrb[12].mxu0  ;;  %v1445_v10 = vpop.f32.mrb[12].mxu1 }
 0x6fe   : > { %v1921_v11 = vpop.f32.mrb[13].mxu0  ;;  %v1941_v12 = vpop.f32.mrb[13].mxu1  ;;  %v1452_v17 = vrot.slane %v1339_v9, 7  ;;  %v1547_v18 = vrot.slane %v1445_v10, 1 }
 0x6ff   : > { %v1342_v13 = vpop.f32.mrb[14].mxu0  ;;  %v1448_v15 = vpop.f32.mrb[14].mxu1 }
 0x700   : > { %v1453_v19 = vrot.slane %v1342_v13, 7  ;;  %v1548_v20 = vrot.slane %v1448_v15, 1  ;;  %v1922_v21 = vpop.f32.mrb[15].mxu0  ;;  %v1942_v14 = vpop.f32.mrb[15].mxu1 }
 0x702   : > { %v1455_v22 = vsel %vm645_vm2, %v1453_v19, %v1452_v17  ;;  %v1549_v1 = vsel %vm717_vm4, %v1547_v18, %v1548_v20  ;;  %v1454_v23 = vsel %vm645_vm2, %v1452_v17, %v1453_v19  ;;  %v1550_v24 = vsel %vm717_vm4, %v1548_v20, %v1547_v18 }
 0x703   : > { %v1456_v25 = vsel %vm2204_vm3, %v1455_v22, 0.0  ;;  %v1552_v35 = vsel %vm2216_vm5, %v1550_v24, 0.0 }
 0x71d   : > { %v1540_v27 = vpop.f32.mrb[16].mxu0 }
 0x71e   : > { %v1541_v28 = vadd.f32 %v1540_v27, %v1456_v25  ;;  %v1961_v29 = vpop.f32.mrb[17].mxu0 }
 0x71f   : > { %v1543_v31 = vpop.f32.mrb[18].mxu0 }
 0x720   : > { %v1553_v32 = vadd.f32 %v1549_v1, %v1541_v28  ;;  %v1544_v33 = vadd.f32 %v1543_v31, %v1454_v23  ;;  %v1962_v34 = vpop.f32.mrb[19].mxu0 }
 0x722   : > { %v1562_v16 = vadd.f32 %v1731_v30, %v1553_v32  ;;  %v1554_v36 = vadd.f32 %v1552_v35, %v1544_v33 }
 0x724   : > { %v1564_v26 = vmax.f32 %v1562_v16, 0.0  ;;  %v1563_v37 = vadd.f32 %v1731_v30, %v1554_v36 }
 0x726   : > { %1566 = vst [vmem:[%s442_s22] sm:$0xff] %v1564_v26  ;;  %v1565_v38 = vmax.f32 %v1563_v37, 0.0 }
 0x728   : > { %1567 = vst [vmem:[%s442_s22 + $0x8] sm:$0xff] %v1565_v38 }
 0x729 PF: > { %s23_s25 = sadd.s32 1, %s2048_s25  }
 0x72a   : > { %p20_p4 = scmp.ge.s32.totalorder %s23_s25, 4  }
 0x72c   :  { %22 = sbr.rel (!%p20_p4) target bundleno = 1 (0x1), region = 106 }

</bundles_post_ra>
